<compile_context>
chip_gen: v6e
topology: v6e:2x2x1
jax: 0.10.0
libtpu: 0.0.40
codegen_flags: <defaults>
</compile_context>

<pallas_src>
import functools
import math

import jax
import jax.numpy as jnp
from jax.experimental import pallas as pl
from jax.experimental.pallas import tpu as pltpu

_LANE = 512                      # lane-dense last dim (multiple of 128)
_TARGET_BLOCK_BYTES = 8 << 20    # ~8 MiB per block, for every dtype
_VMEM_LIMIT_BYTES = 48 << 20     # 2 arrays x double-buffer x 8 MiB = 32 MiB + headroom
_MIN_GRID_STEPS = 4              # keep >=4 steps so both v7x TensorCores get work
_MIN_PALLAS_ELEMENTS = 1 << 16   # below this, plain XLA wins (launch/plumbing dominate)


def _ceil_div(a, b):
    return -(-a // b)


def _round_up(a, b):
    return _ceil_div(a, b) * b


def _cosine_bert_head_kernel(params_ref, scores_ref, out_ref, *,
                             enforce_w_positivity, return_logits):
    # params_ref: SMEM (2,) f32 -> [w, b]
    w = params_ref[0]
    b = params_ref[1]
    if enforce_w_positivity:
        w = jnp.abs(w)
    # Compute in f32 regardless of input dtype (explicit upcast for bf16 on v5e).
    x = scores_ref[...].astype(jnp.float32)
    logits = w * x + b
    if return_logits:
        out_ref[...] = logits.astype(out_ref.dtype)
    else:
        # Exact sigmoid; the exp runs on the EUP and the divide is cheap next to
        # HBM traffic (fully hidden under DMA).
        probs = 1.0 / (1.0 + jnp.exp(-logits))
        out_ref[...] = probs.astype(out_ref.dtype)


def cosine_bert_head(scores, w, b, *, enforce_w_positivity=False,
                     return_logits=False,
                     min_pallas_elements=_MIN_PALLAS_ELEMENTS):
    """Pallas implementation of CosineBertHead.forward.

    scores: float array of any shape (batch of cosine values)
    w, b:   scalar parameters (float32)
    """
    orig_shape = scores.shape
    in_dtype = scores.dtype
    # Probabilities/logits in a sub-float dtype would be lossy/meaningless;
    # force float32 output for non-float inputs, otherwise follow scores dtype.
    out_dtype = in_dtype if jnp.issubdtype(in_dtype, jnp.floating) else jnp.float32
    total = math.prod(orig_shape) if orig_shape else 1

    w32 = jnp.asarray(w, jnp.float32)
    b32 = jnp.asarray(b, jnp.float32)

    # Tiny-input fast path: XLA fuses scale+sigmoid in a single pass with no
    # custom-call launch or reshape/pad plumbing.
    if total < min_pallas_elements:
        w_eff = jnp.abs(w32) if enforce_w_positivity else w32
        logits = w_eff * scores.astype(jnp.float32) + b32
        out = logits if return_logits else jax.nn.sigmoid(logits)
        return out.astype(out_dtype)

    itemsize = jnp.dtype(in_dtype).itemsize
    sublane = {4: 8, 2: 16, 1: 32}.get(itemsize, 8)

    # Lane-dense 2-D view: (rows, _LANE).  Only the <=511-element tail is ever
    # padded; when total is lane-aligned these reshapes are bitcasts (no extra
    # HBM pass).
    rows = _ceil_div(total, _LANE)
    padded_total = rows * _LANE
    flat = scores.reshape(-1)
    if padded_total != total:
        flat = jnp.pad(flat, (0, padded_total - total))
    x2d = flat.reshape(rows, _LANE)

    # Byte-based block cap (~8 MiB regardless of dtype), rounded to the dtype's
    # sublane packing.
    tb_cap = max(sublane,
                 (_TARGET_BLOCK_BYTES // (_LANE * itemsize)) // sublane * sublane)

    if rows <= sublane * _MIN_GRID_STEPS:
        # Few rows: a single block spanning the full row extent (always legal,
        # even when rows is not a sublane multiple).
        tb = rows
    else:
        tb = min(tb_cap, _round_up(rows, sublane))
        # Guarantee enough grid steps for both v7x TensorCores / pipelining.
        if _ceil_div(rows, tb) < _MIN_GRID_STEPS:
            tb = _round_up(_ceil_div(rows, _MIN_GRID_STEPS), sublane)
    grid = pl.cdiv(rows, tb)   # Pallas masks the ragged last block

    params = jnp.stack([w32, b32])
    kernel = functools.partial(
        _cosine_bert_head_kernel,
        enforce_w_positivity=enforce_w_positivity,
        return_logits=return_logits,
    )

    out2d = pl.pallas_call(
        kernel,
        out_shape=jax.ShapeDtypeStruct((rows, _LANE), out_dtype),
        grid=(grid,),
        in_specs=[
            pl.BlockSpec(memory_space=pltpu.SMEM),            # [w, b] scalars
            pl.BlockSpec((tb, _LANE), lambda i: (i, 0)),      # scores tile
        ],
        out_specs=pl.BlockSpec((tb, _LANE), lambda i: (i, 0)),
        compiler_params=pltpu.CompilerParams(
            dimension_semantics=("parallel",),                # megacore-shard rows on v7x
            vmem_limit_bytes=_VMEM_LIMIT_BYTES,
        ),
    )(params, x2d)

    out_flat = out2d.reshape(-1)
    if padded_total != total:
        out_flat = out_flat[:total]
    return out_flat.reshape(orig_shape)


if __name__ == "__main__":
    key = jax.random.PRNGKey(0)
    w = jnp.float32(1.0)
    b = jnp.float32(0.0)

    # Small batch of "cosine values" in [-1, 1]; force the Pallas path so the
    # kernel itself is exercised at a small shape.
    scores = jax.random.uniform(key, (2, 128), jnp.float32, minval=-1.0, maxval=1.0)
    probs = cosine_bert_head(scores, w, b, min_pallas_elements=0)
    jax.block_until_ready(probs)
    assert probs.shape == scores.shape
    assert jnp.allclose(probs, jax.nn.sigmoid(w * scores + b), atol=1e-6, rtol=1e-6)

    # return_logits variant.
    logits = cosine_bert_head(scores, w, b, return_logits=True, min_pallas_elements=0)
    jax.block_until_ready(logits)
    assert jnp.allclose(logits, w * scores + b, atol=1e-6, rtol=1e-6)

    # enforce_w_positivity variant (negative w -> |w|).
    probs_pos = cosine_bert_head(scores, jnp.float32(-2.0), b,
                                 enforce_w_positivity=True, min_pallas_elements=0)
    jax.block_until_ready(probs_pos)
    assert jnp.allclose(probs_pos, jax.nn.sigmoid(2.0 * scores), atol=1e-6)

    # Lane-aligned shape above the fast-path threshold: zero-copy wrapper path,
    # multi-step grid with a ragged last row-block.
    scores_big = jax.random.uniform(jax.random.PRNGKey(1), (136, 512), jnp.float32,
                                    minval=-1.0, maxval=1.0)
    probs_big = cosine_bert_head(scores_big, jnp.float32(1.5), jnp.float32(-0.25))
    jax.block_until_ready(probs_big)
    assert probs_big.shape == scores_big.shape
    assert jnp.allclose(probs_big, jax.nn.sigmoid(1.5 * scores_big - 0.25),
                        atol=1e-6, rtol=1e-6)

    # Odd, non-lane-aligned shape exercises the tail-pad / unpad path.
    scores_odd = jax.random.uniform(jax.random.PRNGKey(2), (3, 37), jnp.float32,
                                    minval=-1.0, maxval=1.0)
    probs_odd = cosine_bert_head(scores_odd, jnp.float32(1.5), jnp.float32(-0.25),
                                 min_pallas_elements=0)
    jax.block_until_ready(probs_odd)
    assert probs_odd.shape == scores_odd.shape
    assert jnp.allclose(probs_odd, jax.nn.sigmoid(1.5 * scores_odd - 0.25),
                        atol=1e-6, rtol=1e-6)

    # bf16 input (exercises byte-based block cap / sublane packing path).
    scores_bf16 = scores.astype(jnp.bfloat16)
    probs_bf16 = cosine_bert_head(scores_bf16, w, b, min_pallas_elements=0)
    jax.block_until_ready(probs_bf16)
    ref_bf16 = jax.nn.sigmoid(scores_bf16.astype(jnp.float32)).astype(jnp.bfloat16)
    assert probs_bf16.dtype == jnp.bfloat16
    assert jnp.allclose(probs_bf16.astype(jnp.float32), ref_bf16.astype(jnp.float32),
                        atol=1e-2, rtol=1e-2)

    # Tiny-input fast path (default threshold -> plain XLA).
    probs_fast = cosine_bert_head(scores, w, b)
    jax.block_until_ready(probs_fast)
    assert jnp.allclose(probs_fast, jax.nn.sigmoid(w * scores + b), atol=1e-6, rtol=1e-6)

    print("KERNEL_OK")
</pallas_src>

<mosaic_0001>
module attributes {stable_mosaic.version = 11 : i64} {
  func.func @_cosine_bert_head_kernel(%arg0: i32, %arg1: memref<2xf32, #tpu.memory_space<smem>>, %arg2: memref<1x512xf32, #tpu.memory_space<vmem>>, %arg3: memref<1x512xf32, #tpu.memory_space<vmem>>) attributes {dimension_semantics = [#tpu.dimension_semantics<parallel>], iteration_bounds = array<i64: 1>, scalar_prefetch = 0 : i64, scratch_operands = 0 : i64, tpu.core_type = #tpu.core_type<tc>, window_params = [{transform_indices = @transform_0, window_bounds = array<i64: 2>}, {transform_indices = @transform_1, window_bounds = array<i64: 1, 512>}, {transform_indices = @transform_2, window_bounds = array<i64: 1, 512>}]} {
    %c0 = arith.constant 0 : index
    %0 = memref.load %arg1[%c0] : memref<2xf32, #tpu.memory_space<smem>>
    %c1 = arith.constant 1 : index
    %1 = memref.load %arg1[%c1] : memref<2xf32, #tpu.memory_space<smem>>
    %c0_0 = arith.constant 0 : index
    %c0_1 = arith.constant 0 : index
    %2 = vector.load %arg2[%c0_0, %c0_1] : memref<1x512xf32, #tpu.memory_space<vmem>>, vector<1x512xf32>
    %3 = vector.broadcast %0 : f32 to vector<1x512xf32>
    %4 = arith.mulf %3, %2 : vector<1x512xf32>
    %5 = vector.broadcast %1 : f32 to vector<1x512xf32>
    %6 = arith.addf %4, %5 : vector<1x512xf32>
    %cst = arith.constant 0.000000e+00 : f32
    %7 = vector.broadcast %cst : f32 to vector<1x512xf32>
    %8 = arith.subf %7, %6 : vector<1x512xf32>
    %9 = math.exp %8 : vector<1x512xf32>
    %cst_2 = arith.constant 1.000000e+00 : f32
    %10 = vector.broadcast %cst_2 : f32 to vector<1x512xf32>
    %11 = arith.addf %10, %9 : vector<1x512xf32>
    %cst_3 = arith.constant 1.000000e+00 : f32
    %12 = vector.broadcast %cst_3 : f32 to vector<1x512xf32>
    %13 = arith.divf %12, %11 : vector<1x512xf32>
    %c0_4 = arith.constant 0 : index
    %c0_5 = arith.constant 0 : index
    %14 = vector.load %arg3[%c0_4, %c0_5] : memref<1x512xf32, #tpu.memory_space<vmem>>, vector<1x512xf32>
    tpu.vector_store %arg3[%c0_4, %c0_5], %13 {strides = array<i32>} : memref<1x512xf32, #tpu.memory_space<vmem>>, vector<1x512xf32>,
    return
  }
  func.func @transform_0(%arg0: i32) -> i32 {
    %c0_i32 = arith.constant 0 : i32
    %c0_i32_0 = arith.constant 0 : i32
    return %c0_i32 : i32
  }
  func.func @transform_1(%arg0: i32) -> (i32, i32) {
    %c0_i32 = arith.constant 0 : i32
    %c0_i32_0 = arith.constant 0 : i32
    return %arg0, %c0_i32 : i32, i32
  }
  func.func @transform_2(%arg0: i32) -> (i32, i32) {
    %c0_i32 = arith.constant 0 : i32
    %c0_i32_0 = arith.constant 0 : i32
    return %arg0, %c0_i32 : i32, i32
  }
}

</mosaic_0001>

<bundles_post_ra>
// kernel: tpu_custom_call.1
= control target key start
LH: loop header
LB: loop body
LE: loop exit
PB: predicated region body
PF: predicated region fallthrough
CT: control target
= control target key end

     0   :  { %7 = vsyncpa [#allocation5], 0  ;;  %s158_s0 = inlined_call_operand.hbm [shape: f32[2], index: 0, kind: input, shape index: {}]   ;;  %s159_s1 = inlined_call_operand.hbm [shape: f32[1,512], index: 1, kind: input, shape index: {}]   ;;  %s160_s2 = inlined_call_operand.hbm [shape: f32[1,512], index: 2, kind: output, shape index: {}]  }
   0x1   :  { %8 = vsyncpa [#allocation3], 0 }
   0x2   :  { %9 = vsyncpa [#allocation4], 0  ;;  %s131_s9 = smov [#allocation2]   ;;  %s132_s12 = smov [#allocation6]  }
   0x3   :  { %17 = dma.hbm_to_smem %s158_s0, 16, %s131_s9, [#allocation5]  }
   0x4   :  { %s24_s13 = sshll.u32 %s132_s12, 4  ;;  %s25_s13 = int_to_ptr.vmem [resolvable:$true] %s24_s13 }
   0x5   :  { %s93_s14 = scalar_lea.vmem %s25_s13, 64  ;;  %p98_p1 = scmp.lt.s32.totalorder %s25_s13, %s25_s13 }
   0x6   :  { %p94_p0 = scmp.ne.s32.totalorder %s25_s13, %s93_s14  ;;  %p99_p2 = scmp.lt.s32.totalorder %s93_s14, %s93_s14 }
   0x8   :  { %p100_p3 = por %p99_p2, %p98_p1 }
   0xa   :  { %p101_p4 = pnand %p100_p3, %p94_p0 }
   0xc   :  { %104 = shalt.err (!%p101_p4)
}
   0xd   :  { %27 = dma.hbm_to_vmem [thread:$0]  %s159_s1, 64, %s25_s13, [#allocation3]  }
   0xe   :  { %125 = dma.done.wait [#allocation5], 16  }
   0xf   :  { %126 = vsyncadd [#allocation5], 4294967280 }
  0x10   :  { %127 = dma.done.wait [#allocation3], 64  }
  0x11   :  { %128 = vsyncadd [#allocation3], 4294967232 }
  0x12   :  { %34 = sfence }
  0x13   :  { %s35_s0 = sld [smem:[#allocation2]]  ;;  %v37_v0 = vld [vmem:[#allocation6] sm:$0xf]  ;;  %v48_v9 = vlaneseq  ;;  %s133_s1 = smov [#allocation7]  }
  0x14   :  { %s69_s17 = sld [smem:[#allocation2 + $0x1]]  ;;  %s59_s18 = sshll.u32 %s133_s1, 4  ;;  %s60_s18 = int_to_ptr.vmem [resolvable:$true] %s59_s18 }
  0x15   :  { %vm50_vm0 = vcmp.lt.s32.totalorder %v48_v9, 512  ;;  %s105_s19 = scalar_lea.vmem %s60_s18, 64  ;;  %p110_p6 = scmp.lt.s32.totalorder %s60_s18, %s60_s18 }
  0x16   :  { %p106_p5 = scmp.ne.s32.totalorder %s60_s18, %s105_s19  ;;  %p111_p7 = scmp.lt.s32.totalorder %s105_s19, %s105_s19 }
  0x18   :  { %p112_p8 = por %p111_p7, %p110_p6 }
  0x19   :  { %v38_v1 = vstv %s35_s0 }
  0x1a   :  { %v39_v2 = vmul.f32 %v38_v1, %v37_v0  ;;  %v40_v3 = vstv %s69_s17  ;;  %p113_p9 = pnand %p112_p8, %p106_p5 }
  0x1c   :  { %v41_v4 = vadd.f32 %v40_v3, %v39_v2 }
  0x1e   :  { %v42_v5 = vsub.f32 0.0, %v41_v4 }
  0x20   :  { %v43_v6 = vmul.f32 1.442695, %v42_v5 }
  0x22   :  { %73 = vpow2.f32 %v43_v6 }
  0x2f   :  { %v74_v7 = vpop.eup %73 }
  0x30   :  { %v45_v8 = vadd.f32 1.0, %v74_v7 }
  0x32   :  { %75 = vrcp.f32 %v45_v8 }
  0x3f   :  { %v76_v10 = vpop.eup %75 }
  0x40   :  { %52 = vst.msk [vmem:[#allocation7] sm:$0xf] %vm50_vm0, %v76_v10 }
  0x41   :  { %116 = shalt.err (!%p113_p9)
}
  0x42   :  { %62 = dma.vmem_to_hbm [thread:$0]  %s60_s18, 64, %s160_s2, [#allocation4]  }
  0x43   :  { %129 = dma.done.wait [#allocation4], 64  }
  0x44   :  { %130 = vsyncadd [#allocation4], 4294967232 }
  0x45   :  { %66 = vsyncpa [#allocation3], 1 }
  0x46   :  { %67 = vsyncpa [#allocation4], 1 }
  0x47   :  { %68 = vsyncpa [#allocation5], 1 }

</bundles_post_ra>
